<compile_context>
chip_gen: v6e
topology: v6e:2x2x1
jax: 0.10.0
libtpu: 0.0.40
codegen_flags: <defaults>
</compile_context>

<pallas_src>
import functools

import jax
import jax.numpy as jnp
import numpy as np
from jax.experimental import pallas as pl
from jax.experimental.pallas import tpu as pltpu


def _round_up(a, b):
    return ((a + b - 1) // b) * b


@functools.lru_cache(maxsize=None)
def _vmem_capacity_bytes():
    """Per-TensorCore VMEM capacity; conservative 64 MiB if the query fails."""
    try:
        cap = int(pltpu.get_tpu_info().vmem_capacity_bytes)
        if cap > 0:
            return cap
    except Exception:
        pass
    return 64 * 1024 * 1024


@functools.lru_cache(maxsize=None)
def _single_buffer_supported():
    """Probe (eagerly, once) whether pipeline_mode=pl.Buffered(1) lowers here."""
    try:
        const_spec = pl.BlockSpec((8, 128), lambda i: (0, 0),
                                  pipeline_mode=pl.Buffered(1))

        def _probe(a_ref, o_ref):
            o_ref[...] = a_ref[...] * 2.0

        out = pl.pallas_call(
            _probe,
            out_shape=jax.ShapeDtypeStruct((16, 128), jnp.float32),
            grid=(2,),
            in_specs=[const_spec],
            out_specs=pl.BlockSpec((8, 128), lambda i: (i, 0)),
        )(jnp.ones((8, 128), jnp.float32))
        return bool(jnp.all(out == 2.0))
    except Exception:
        return False


def _vq_kernel(x_ref, e_ref, e2h_ref, q_ref, ind_ref, *, c_chunk, low_precision):
    """One (TN, D) token tile against the (Cp, D) VMEM-resident codebook.

    The codebook axis is processed in chunks of `c_chunk` rows so that the live
    (TN, c_chunk) intermediates stay small even for very large codebooks.
    """
    x = x_ref[...]                                  # (TN, D)
    tn, _ = x.shape
    cp = e_ref.shape[0]
    n_chunks = cp // c_chunk

    if low_precision:
        # Fast bf16 MXU path; numerics-affecting (near-tie argmax may flip).
        mm_dtype = jnp.bfloat16
    else:
        mm_dtype = jnp.promote_types(x.dtype, e_ref.dtype)
    x_mm = x.astype(mm_dtype)

    def chunk_argmax(ci, off):
        # score/2 = x.e - 0.5*||e||^2  (monotone in -cdist: sqrt and the
        # per-row ||x||^2 are dropped, the 2x is folded into the hoisted term).
        e_c = e_ref[pl.ds(off, c_chunk), :].astype(mm_dtype)            # (Cc, D)
        xy = jax.lax.dot_general(x_mm, e_c, (((1,), (1,)), ((), ())),
                                 preferred_element_type=jnp.float32)    # (TN, Cc)
        s = xy - e2h_ref[ci]                                            # (TN, Cc)
        m = jnp.max(s, axis=-1, keepdims=True)                          # (TN, 1)
        iota = jax.lax.broadcasted_iota(jnp.int32, (tn, c_chunk), 1)
        # first-occurrence argmax within the chunk (torch.argmax tie-breaking)
        loc = jnp.min(jnp.where(s == m, iota, jnp.int32(c_chunk)),
                      axis=-1, keepdims=True)                           # (TN, 1)
        return m, loc + off

    def chunk_gather(off, best_i):
        # Exact row copy of the winners via a one-hot matmul on the MXU.
        # TODO(synk): for very large C*D replace with an in-VMEM row gather;
        # the one-hot contraction spends TN*C*D MACs purely copying rows.
        iota = jax.lax.broadcasted_iota(jnp.int32, (tn, c_chunk), 1)
        onehot = (iota == (best_i - off)).astype(e_ref.dtype)           # (TN, Cc)
        e_c = e_ref[pl.ds(off, c_chunk), :]
        return jax.lax.dot_general(onehot, e_c, (((1,), (0,)), ((), ())),
                                   preferred_element_type=jnp.float32)  # (TN, D)

    # ---- argmax over all codebook chunks (running max / index) ------------
    best_m, best_i = chunk_argmax(0, 0)
    if n_chunks > 1:
        def amax_body(ci, carry):
            bm, bi = carry
            off = pl.multiple_of(ci * c_chunk, c_chunk)
            m, idx = chunk_argmax(ci, off)
            take = m > bm                 # strict: earlier chunk wins exact ties
            return jnp.where(take, m, bm), jnp.where(take, idx, bi)
        best_m, best_i = jax.lax.fori_loop(1, n_chunks, amax_body,
                                           (best_m, best_i))

    ind_ref[...] = best_i

    # ---- gather the winning codebook rows ----------------------------------
    q = chunk_gather(0, best_i)
    if n_chunks > 1:
        def gather_body(ci, acc):
            off = pl.multiple_of(ci * c_chunk, c_chunk)
            return acc + chunk_gather(off, best_i)
        q = jax.lax.fori_loop(1, n_chunks, gather_body, q)
    q_ref[...] = q.astype(q_ref.dtype)


def _chunking(c, creq):
    creq = max(128, (int(creq) // 128) * 128)
    if c <= creq:
        return c, c, 1                      # single chunk, no codebook padding
    cp = _round_up(c, creq)
    return creq, cp, cp // creq


@functools.partial(jax.jit, static_argnames=("tn", "c_chunk", "low_precision",
                                             "single_buffer"))
def _vq_forward(x, embed, *, tn, c_chunk, low_precision, single_buffer):
    B, N, D = x.shape
    e = embed.reshape(embed.shape[-2], embed.shape[-1])              # (C, D)
    C = e.shape[0]
    flat = x.reshape(B * N, D)                                       # pack 'h * d' (h=1)
    M = B * N

    # ---- token tile (multiple of 128; token axis is zero-padded) ----------
    tile = max(128, (int(tn) // 128) * 128)
    if M <= tile:
        tile = _round_up(M, 128)
    # Give both v7x TensorCores a grid step when one tile would cover the whole
    # input (only if halving adds no extra padding; a second grid step costs
    # ~0.35us on single-TC chips, negligible).
    if tile > 128 and _round_up(M, tile) == tile:
        half = max(128, ((tile // 2 + 127) // 128) * 128)
        if _round_up(M, half) == _round_up(M, tile):
            tile = half

    # ---- codebook chunking -------------------------------------------------
    cc, Cp, n_chunks = _chunking(C, c_chunk)

    # ---- generation-aware per-TensorCore VMEM budget -----------------------
    x_it = flat.dtype.itemsize
    e_it = e.dtype.itemsize
    cb_copies = 1 if single_buffer else 2

    def vmem_bytes(tile_, cc_, cp_, nch_):
        interm = 4 * tile_ * cc_ * 4 + 2 * tile_ * D * 4   # score/iota/onehot/acc
        io = (2 * tile_ * D * x_it                         # x tiles (2-buffered)
              + 2 * tile_ * D * e_it                       # quantize tiles
              + 2 * tile_ * 128 * 4)                       # (tile,1) idx blocks pad lanes
        cbook = cb_copies * cp_ * D * e_it + 2 * nch_ * 8 * cc_ * 4
        return interm + io + cbook

    cap = _vmem_capacity_bytes()                           # per-TC capacity
    budget = max(cap - 16 * 1024 * 1024, cap // 2)         # ~48MiB on v7x, ~112MiB v5e/v6e
    while vmem_bytes(tile, cc, Cp, n_chunks) > budget and tile > 128:
        tile = max(128, ((tile // 2) // 128) * 128)
    while vmem_bytes(tile, cc, Cp, n_chunks) > budget and cc > 128:
        cc2 = max(128, ((cc // 2) // 128) * 128)
        if cc2 >= cc:
            break
        cc, Cp, n_chunks = _chunking(C, cc2)

    m_pad = _round_up(M, tile)
    if m_pad != M:
        flat = jnp.pad(flat, ((0, m_pad - M), (0, 0)))
    grid = m_pad // tile

    # ---- hoisted 0.5*||e||^2 and codebook padding (pad rows can never win) --
    e2h = 0.5 * jnp.sum(jnp.square(e.astype(jnp.float32)), axis=-1)   # (C,)
    if Cp != C:
        e2h = jnp.pad(e2h, (0, Cp - C), constant_values=1e30)
        e_in = jnp.pad(e, ((0, Cp - C), (0, 0)))
    else:
        e_in = e
    e2h = e2h.reshape(n_chunks, 1, cc)

    if single_buffer:
        # Grid-invariant input: one resident VMEM copy instead of a dead
        # double buffer (saves Cp*D*itemsize per TensorCore).
        codebook_spec = pl.BlockSpec((Cp, D), lambda i: (0, 0),
                                     pipeline_mode=pl.Buffered(1))
    else:
        codebook_spec = pl.BlockSpec((Cp, D), lambda i: (0, 0))

    bytes_needed = vmem_bytes(tile, cc, Cp, n_chunks)
    vmem_limit = int(min(cap, max(48 * 1024 * 1024, 2 * bytes_needed)))

    kernel = functools.partial(_vq_kernel, c_chunk=cc,
                               low_precision=low_precision)

    q, ind = pl.pallas_call(
        kernel,
        out_shape=(jax.ShapeDtypeStruct((m_pad, D), e.dtype),
                   jax.ShapeDtypeStruct((m_pad, 1), jnp.int32)),
        grid_spec=pltpu.PrefetchScalarGridSpec(
            num_scalar_prefetch=0,
            grid=(grid,),
            in_specs=[
                pl.BlockSpec((tile, D), lambda i: (i, 0)),      # token tile
                codebook_spec,                                  # resident codebook
                pl.BlockSpec((n_chunks, 1, cc), lambda i: (0, 0, 0)),  # 0.5*||e||^2
            ],
            out_specs=(
                pl.BlockSpec((tile, D), lambda i: (i, 0)),      # quantize (lane-dense)
                # (tile, 1) index output kept narrow: the lane-dense (tile, D)
                # quantize output dominates the store path and densifying the
                # per-row index needs a sublane->lane relayout.
                # TODO(synk): re-measure a (1, tile) lane-dense index layout.
                pl.BlockSpec((tile, 1), lambda i: (i, 0)),
            ),
        ),
        compiler_params=pltpu.CompilerParams(
            dimension_semantics=("parallel",),
            vmem_limit_bytes=vmem_limit),
    )(flat, e_in, e2h)

    quantize = q[:M].reshape(B, N, D)
    embed_ind = ind[:M, 0].reshape(B, N)   # torch returns int64; int32 on TPU
    return quantize, embed_ind


def vector_quantize_forward(x, embed, *, tn=512, c_chunk=2048,
                            low_precision=False):
    """Pallas forward of VectorQuantize (heads=1, Euclidean codebook, mask=None).

    x:     (B, N, D)
    embed: (1, C, D) codebook buffer
    returns (quantize (B, N, D) embed.dtype, embed_ind (B, N) int32)
    """
    # TODO(synk): optional `mask` path (final torch.where(mask, quantize, x)),
    # multi-head and cosine-sim configurations are not implemented (default
    # VectorQuantize config only).
    single_buffer = _single_buffer_supported()   # eager, cached capability probe
    return _vq_forward(x, embed, tn=int(tn), c_chunk=int(c_chunk),
                       low_precision=bool(low_precision),
                       single_buffer=single_buffer)


def _init_codebook(key, num_codebooks, codebook_size, dim):
    # Deterministic stand-in for kaiming_uniform_ init (bound = sqrt(6 / fan_in)).
    bound = float(np.sqrt(6.0 / dim))
    return jax.random.uniform(
        key, (num_codebooks, codebook_size, dim),
        minval=-bound, maxval=bound, dtype=jnp.float32)


def _reference(x, embed):
    e = embed[0]
    B, N, D = x.shape
    flat = x.reshape(B * N, D)
    d2 = jnp.sum((flat[:, None, :] - e[None, :, :]) ** 2, axis=-1)
    ind = jnp.argmin(d2, axis=-1).astype(jnp.int32).reshape(B, N)
    q = e[ind.reshape(-1)].reshape(B, N, D)
    return q, ind


if __name__ == "__main__":
    key = jax.random.PRNGKey(0)
    k1, k2, k3, k4 = jax.random.split(key, 4)

    # --- test 1: small shapes, single-chunk (default) path ------------------
    B, N, D, C = 2, 16, 32, 64
    x = jax.random.normal(k1, (B, N, D), dtype=jnp.float32)
    embed = _init_codebook(k2, 1, C, D)
    quantize, embed_ind = vector_quantize_forward(x, embed)
    jax.block_until_ready((quantize, embed_ind))
    ref_q, ref_ind = _reference(x, embed)
    np.testing.assert_array_equal(np.asarray(embed_ind), np.asarray(ref_ind))
    np.testing.assert_allclose(np.asarray(quantize), np.asarray(ref_q),
                               rtol=1e-5, atol=1e-5)

    # --- test 2: forces the chunked-codebook path (C > c_chunk, padded C) ---
    B2, N2, D2, C2 = 2, 24, 32, 200
    x2 = jax.random.normal(k3, (B2, N2, D2), dtype=jnp.float32)
    embed2 = _init_codebook(k4, 1, C2, D2)
    quantize2, embed_ind2 = vector_quantize_forward(x2, embed2, c_chunk=128)
    jax.block_until_ready((quantize2, embed_ind2))
    ref_q2, ref_ind2 = _reference(x2, embed2)
    np.testing.assert_array_equal(np.asarray(embed_ind2), np.asarray(ref_ind2))
    np.testing.assert_allclose(np.asarray(quantize2), np.asarray(ref_q2),
                               rtol=1e-5, atol=1e-5)

    print("KERNEL_OK")
</pallas_src>

<mosaic_0001>
module attributes {stable_mosaic.version = 11 : i64} {
  func.func @_probe(%arg0: i32, %arg1: memref<8x128xf32, #tpu.memory_space<vmem>>, %arg2: memref<8x128xf32, #tpu.memory_space<vmem>>) attributes {dimension_semantics = [#tpu.dimension_semantics<arbitrary>], iteration_bounds = array<i64: 2>, scalar_prefetch = 0 : i64, scratch_operands = 0 : i64, tpu.core_type = #tpu.core_type<tc>, window_params = [{pipeline_mode = #tpu.pipeline_mode<synchronous>, transform_indices = @transform_0, window_bounds = array<i64: 8, 128>}, {transform_indices = @transform_1, window_bounds = array<i64: 8, 128>}]} {
    %c0 = arith.constant 0 : index
    %c0_0 = arith.constant 0 : index
    %0 = vector.load %arg1[%c0, %c0_0] : memref<8x128xf32, #tpu.memory_space<vmem>>, vector<8x128xf32>
    %cst = arith.constant 2.000000e+00 : f32
    %1 = vector.broadcast %cst : f32 to vector<8x128xf32>
    %2 = arith.mulf %0, %1 : vector<8x128xf32>
    %c0_1 = arith.constant 0 : index
    %c0_2 = arith.constant 0 : index
    %3 = vector.load %arg2[%c0_1, %c0_2] : memref<8x128xf32, #tpu.memory_space<vmem>>, vector<8x128xf32>
    tpu.vector_store %arg2[%c0_1, %c0_2], %2 {strides = array<i32>} : memref<8x128xf32, #tpu.memory_space<vmem>>, vector<8x128xf32>,
    return
  }
  func.func @transform_0(%arg0: i32) -> (i32, i32) {
    %c0_i32 = arith.constant 0 : i32
    %c0_i32_0 = arith.constant 0 : i32
    %c0_i32_1 = arith.constant 0 : i32
    return %c0_i32, %c0_i32_0 : i32, i32
  }
  func.func @transform_1(%arg0: i32) -> (i32, i32) {
    %c0_i32 = arith.constant 0 : i32
    %c0_i32_0 = arith.constant 0 : i32
    return %arg0, %c0_i32 : i32, i32
  }
}

module attributes {stable_mosaic.version = 11 : i64} {
  func.func @_vq_kernel(%arg0: i32, %arg1: memref<128x32xf32, #tpu.memory_space<vmem>>, %arg2: memref<64x32xf32, #tpu.memory_space<vmem>>, %arg3: memref<1x1x64xf32, #tpu.memory_space<vmem>>, %arg4: memref<128x32xf32, #tpu.memory_space<vmem>>, %arg5: memref<128x1xi32, #tpu.memory_space<vmem>>) attributes {dimension_semantics = [#tpu.dimension_semantics<parallel>], iteration_bounds = array<i64: 1>, scalar_prefetch = 0 : i64, scratch_operands = 0 : i64, tpu.core_type = #tpu.core_type<tc>, window_params = [{transform_indices = @transform_0, window_bounds = array<i64: 128, 32>}, {pipeline_mode = #tpu.pipeline_mode<synchronous>, transform_indices = @transform_1, window_bounds = array<i64: 64, 32>}, {pipeline_mode = #tpu.pipeline_mode<synchronous>, transform_indices = @transform_2, window_bounds = array<i64: 1, 1, 64>}, {transform_indices = @transform_3, window_bounds = array<i64: 128, 32>}, {transform_indices = @transform_4, window_bounds = array<i64: 128, 1>}]} {
    %c0 = arith.constant 0 : index
    %c0_0 = arith.constant 0 : index
    %0 = vector.load %arg1[%c0, %c0_0] : memref<128x32xf32, #tpu.memory_space<vmem>>, vector<128x32xf32>
    %c0_1 = arith.constant 0 : index
    %c0_2 = arith.constant 0 : index
    %1 = vector.load %arg2[%c0_1, %c0_2] : memref<64x32xf32, #tpu.memory_space<vmem>>, vector<64x32xf32>
    %cst = arith.constant dense<0.000000e+00> : vector<128x64xf32>
    %2 = tpu.matmul %0, %1, %cst {dimension_numbers = #tpu.dot_dimension_numbers<[1], [1], [0], [0], [0, 0, 1, 0], [], []>} : vector<128x32xf32>, vector<64x32xf32>, vector<128x64xf32> -> vector<128x64xf32>
    %c0_3 = arith.constant 0 : index
    %c0_4 = arith.constant 0 : index
    %c0_5 = arith.constant 0 : index
    %3 = vector.load %arg3[%c0_3, %c0_4, %c0_5] : memref<1x1x64xf32, #tpu.memory_space<vmem>>, vector<1x1x64xf32>
    %4 = vector.shape_cast %3 : vector<1x1x64xf32> to vector<1x64xf32>
    %5 = vector.broadcast %4 : vector<1x64xf32> to vector<128x64xf32>
    %6 = arith.subf %2, %5 : vector<128x64xf32>
    %cst_6 = arith.constant dense<0xFF800000> : vector<128xf32>
    %7 = vector.multi_reduction <maximumf>, %6, %cst_6 [1] : vector<128x64xf32> to vector<128xf32>
    %8 = vector.shape_cast %7 : vector<128xf32> to vector<128x1xf32>
    %9 = tpu.iota {dimensions = array<i32: 1>} : vector<128x64xi32>
    %10 = vector.broadcast %8 : vector<128x1xf32> to vector<128x64xf32>
    %11 = arith.cmpf oeq, %6, %10 : vector<128x64xf32>
    %c64_i32 = arith.constant 64 : i32
    %12 = vector.broadcast %c64_i32 : i32 to vector<128x64xi32>
    %13 = arith.select %11, %9, %12 : vector<128x64xi1>, vector<128x64xi32>
    %cst_7 = arith.constant dense<2147483647> : vector<128xi32>
    %14 = vector.multi_reduction <minsi>, %13, %cst_7 [1] : vector<128x64xi32> to vector<128xi32>
    %15 = vector.shape_cast %14 : vector<128xi32> to vector<128x1xi32>
    %c0_i32 = arith.constant 0 : i32
    %16 = vector.broadcast %c0_i32 : i32 to vector<128x1xi32>
    %17 = arith.addi %15, %16 : vector<128x1xi32>
    %c0_8 = arith.constant 0 : index
    %c0_9 = arith.constant 0 : index
    %18 = vector.load %arg5[%c0_8, %c0_9] : memref<128x1xi32, #tpu.memory_space<vmem>>, vector<128x1xi32>
    tpu.vector_store %arg5[%c0_8, %c0_9], %17 {strides = array<i32>} : memref<128x1xi32, #tpu.memory_space<vmem>>, vector<128x1xi32>,
    %19 = tpu.iota {dimensions = array<i32: 1>} : vector<128x64xi32>
    %c0_i32_10 = arith.constant 0 : i32
    %20 = vector.broadcast %c0_i32_10 : i32 to vector<128x1xi32>
    %21 = arith.subi %17, %20 : vector<128x1xi32>
    %22 = vector.broadcast %21 : vector<128x1xi32> to vector<128x64xi32>
    %23 = arith.cmpi eq, %19, %22 : vector<128x64xi32>
    %24 = arith.extui %23 : vector<128x64xi1> to vector<128x64xi32>
    %25 = arith.sitofp %24 : vector<128x64xi32> to vector<128x64xf32>
    %c0_11 = arith.constant 0 : index
    %c0_12 = arith.constant 0 : index
    %26 = vector.load %arg2[%c0_11, %c0_12] : memref<64x32xf32, #tpu.memory_space<vmem>>, vector<64x32xf32>
    %cst_13 = arith.constant dense<0.000000e+00> : vector<128x32xf32>
    %27 = tpu.matmul %25, %26, %cst_13 {dimension_numbers = #tpu.dot_dimension_numbers<[1], [0], [0], [1], [0, 0, 1, 1], [], []>} : vector<128x64xf32>, vector<64x32xf32>, vector<128x32xf32> -> vector<128x32xf32>
    %c0_14 = arith.constant 0 : index
    %c0_15 = arith.constant 0 : index
    %28 = vector.load %arg4[%c0_14, %c0_15] : memref<128x32xf32, #tpu.memory_space<vmem>>, vector<128x32xf32>
    tpu.vector_store %arg4[%c0_14, %c0_15], %27 {strides = array<i32>} : memref<128x32xf32, #tpu.memory_space<vmem>>, vector<128x32xf32>,
    return
  }
  func.func @transform_0(%arg0: i32) -> (i32, i32) {
    %c0_i32 = arith.constant 0 : i32
    %c0_i32_0 = arith.constant 0 : i32
    return %arg0, %c0_i32 : i32, i32
  }
  func.func @transform_1(%arg0: i32) -> (i32, i32) {
    %c0_i32 = arith.constant 0 : i32
    %c0_i32_0 = arith.constant 0 : i32
    %c0_i32_1 = arith.constant 0 : i32
    return %c0_i32, %c0_i32_0 : i32, i32
  }
  func.func @transform_2(%arg0: i32) -> (i32, i32, i32) {
    %c0_i32 = arith.constant 0 : i32
    %c0_i32_0 = arith.constant 0 : i32
    %c0_i32_1 = arith.constant 0 : i32
    %c0_i32_2 = arith.constant 0 : i32
    return %c0_i32, %c0_i32_0, %c0_i32_1 : i32, i32, i32
  }
  func.func @transform_3(%arg0: i32) -> (i32, i32) {
    %c0_i32 = arith.constant 0 : i32
    %c0_i32_0 = arith.constant 0 : i32
    return %arg0, %c0_i32 : i32, i32
  }
  func.func @transform_4(%arg0: i32) -> (i32, i32) {
    %c0_i32 = arith.constant 0 : i32
    %c0_i32_0 = arith.constant 0 : i32
    return %arg0, %c0_i32 : i32, i32
  }
}

</mosaic_0001>

<bundles_post_ra>
// kernel: tpu_custom_call.1
= control target key start
LH: loop header
LB: loop body
LE: loop exit
PB: predicated region body
PF: predicated region fallthrough
CT: control target
= control target key end

     0   :  { %6 = vsyncpa [#allocation3], 0  ;;  %s448_s0 = inlined_call_operand.hbm [shape: f32[8,128], index: 0, kind: input, shape index: {}]   ;;  %s449_s1 = inlined_call_operand.hbm [shape: f32[16,128], index: 1, kind: output, shape index: {}]  }
   0x1   :  { %7 = vsyncpa [#allocation4], 0 }
   0x2   :  { %9 = vsyncpa [#allocation4 + $0x1], 0  ;;  %s348_s6 = smov 0   ;;  %s350_s7 = smov 0  }
   0x3   :  { %s352_s8 = smov 0   ;;  %s354_s9 = smov 0  }
   0x4 LB: > { %s369_s10 = sadd.s32 4294967295, %s334_s9   ;;  %s184_s11 = sadd.s32 4294967294, %s334_s9   ;;  %s334_s9 = sphi %s354_s9, %s457_s9   ;;  %s330_s8 = sphi %s352_s8, %s456_s8   ;;  %s326_s7 = sphi %s350_s7, %s455_s7   ;;  %s322_s6 = sphi %s348_s6, %s454_s6  }
   0x5   : > { %s373_s12 = sadd.s32 1, %s334_s9   ;;  %s43_s13 = sadd.s32 1, %s330_s8 }
   0x6   : > { %s40_s14 = ssub.s32 %s334_s9, %s373_s12  ;;  %p53_p0 = scmp.ne.s32.totalorder %s330_s8, %s326_s7 }
   0x7   : > { %p41_p1 = scmp.eq.s32.totalorder %s40_s14, 0  ;;  %p54_p2 = scmp.eq.s32.totalorder %s369_s10, 1 }
   0x8   : > { %p59_p3 = scmp.ne.s32.totalorder %s326_s7, %s322_s6  ;;  %p60_p4 = scmp.eq.s32.totalorder %s184_s11, 1 }
   0x9   : > { %s384_s15 = scalar_select %p41_p1, %s330_s8, %s43_s13  }
   0xa   : > { %p386_p5 = por %p54_p2, %p53_p0  ;;  %p390_p6 = por %p60_p4, %p59_p3 }
   0xb   : > { %p185_p7 = scmp.ge.s32.totalorder %s334_s9, 1  ;;  %p67_p8 = scmp.lt.s32.totalorder %s334_s9, 3 }
   0xc   : > { %s451_s17 = scalar_select %p390_p6, 1, 0 }
   0xd   : > { %p208_p9 = scmp.eq.s32.totalorder %s369_s10, 0  ;;  %p397_p10 = pnand %p185_p7, %p67_p8 }
   0xe   : > { %s336_s19 = smov [#allocation2]  }
   0xf   : > { %s80_s20 = sshll.u32 %s336_s19, 4  ;;  %p200_p11 = pneg %p397_p10  ;;  %s81_s20 = int_to_ptr.vmem [resolvable:$true] %s80_s20 }
  0x10   : > { %s255_s21 = scalar_lea.vmem %s81_s20, 128  ;;  %p263_p3 = scmp.lt.s32.totalorder %s81_s20, %s81_s20 }
  0x11   : > { %p201_p12 = pnand %p208_p9, %p200_p11  ;;  %p256_p0 = scmp.ne.s32.totalorder %s81_s20, %s255_s21 }
  0x12   : > { %p264_p4 = scmp.lt.s32.totalorder %s255_s21, %s255_s21 }
  0x13   : > { %p246_p13 = pneg %p201_p12 }
  0x14   : > { %p265_p6 = por %p264_p4, %p263_p3 }
  0x15   : > { %p258_p1 = pnand %p256_p0, %p246_p13 }
  0x17   : > { %p259_p2 = pneg %p258_p1 }
  0x19   : > { %p266_p7 = pnand %p265_p6, %p259_p2 }
  0x1b   : > { %269 = shalt.err (!%p266_p7)
}
  0x1c   : > { %203 = dma.hbm_to_vmem [thread:$0]  (!%p201_p12), %s448_s0, 128, %s81_s20, [#allocation3]  }
  0x1d   : > { %93 = sbr.rel (%p397_p10) target bundleno = 60 (0x3c), region = 24 }
  0x22   : > { %313 = dma.done.wait (%p208_p9), [#allocation3], 128  }
  0x23   : > { %315 = vsyncadd (%p208_p9), [#allocation3], 4294967168  ;;  %s105_s24 = sand.u32 1, %s326_s7   ;;  %s191_s28 = sshll.u32 %s369_s10, 7  ;;  %v108_v0 = vld [vmem:[#allocation2] sm:$0xff] }
  0x24   : > { %s189_s25 = sshll.u32 %s105_s24, 3  ;;  %v109_v1 = vmul.f32 2.0, %v108_v0  ;;  %s123_s2 = scalar_lea.hbm %s449_s1, %s191_s28 }
  0x25   : > { %s107_s26 = scalar_lea.vmem [#allocation5], %s189_s25  ;;  %s112_s3 = scalar_lea.sflag [#allocation4], %s105_s24 }
  0x26   : > { %s125_s27 = sshll.u32 %s107_s26, 4  ;;  %110 = vst [vmem:[%s107_s26] sm:$0xff] %v109_v1  ;;  %s337_s5 = smov [#allocation5]   ;;  %s126_s27 = int_to_ptr.vmem [resolvable:$true] %s125_s27 }
  0x27   : > { %s270_s4 = scalar_lea.vmem %s126_s27, 128  ;;  %s274_s11 = sshll.u32 %s337_s5, 4  ;;  %s275_s11 = int_to_ptr.vmem [resolvable:$false] %s274_s11 }
  0x28   : > { %p271_p6 = scmp.ne.s32.totalorder %s126_s27, %s270_s4  ;;  %s276_s13 = scalar_lea.vmem %s275_s11, 256 }
  0x29   : > { %p277_p10 = scmp.lt.s32.totalorder %s126_s27, %s275_s11  ;;  %p278_p11 = scmp.lt.s32.totalorder %s276_s13, %s270_s4 }
  0x2a   : > { %p272_p8 = pnand %p271_p6, %p386_p5 }
  0x2b   : > { %p279_p12 = por %p278_p11, %p277_p10 }
  0x2c   : > { %p273_p9 = pneg %p272_p8 }
  0x2e   : > { %p280_p13 = pnand %p279_p12, %p273_p9 }
  0x30   : > { %283 = shalt.err (!%p280_p13)
}
  0x31   : > { %s284_s10 = scalar_lea.hbm %s123_s2, 128  ;;  %s288_s19 = scalar_lea.hbm %s449_s1, 256 }
  0x32   : > { %p285_p0 = scmp.ne.s32.totalorder %s123_s2, %s284_s10  ;;  %p289_p3 = scmp.lt.s32.totalorder %s123_s2, %s449_s1 }
  0x33   : > { %p290_p4 = scmp.lt.s32.totalorder %s288_s19, %s284_s10 }
  0x34   : > { %p286_p1 = pnand %p285_p0, %p386_p5 }
  0x35   : > { %p291_p7 = por %p290_p4, %p289_p3 }
  0x36   : > { %p287_p2 = pneg %p286_p1 }
  0x38   : > { %p292_p6 = pnand %p291_p7, %p287_p2 }
  0x3a   : > { %295 = shalt.err (!%p292_p6)
}
  0x3b   : > { %198 = dma.vmem_to_hbm [thread:$0]  (%p386_p5), %s126_s27, 128, %s123_s2, %s112_s3  }
  0x3c PF: > { %p210_p8 = scmp.ge.s32.totalorder %s334_s9, 2  ;;  %s137_s22 = sand.u32 1, %s322_s6  }
  0x3d   : > { %p453_p9 = scmp.ne.s32.totalorder %s451_s17, 0  ;;  %s138_s23 = scalar_lea.sflag [#allocation4], %s137_s22 }
  0x3f   : > { %p205_p10 = pnand %p210_p8, %p453_p9 }
  0x41   : > { %p206_p11 = pneg %p205_p10 }
  0x43   : > { %317 = dma.done.wait (%p206_p11), %s138_s23, 128  }
  0x44   : > { %319 = vsyncadd (%p206_p11), %s138_s23, 4294967168  ;;  %p12_p12 = scmp.ge.s32.totalorder %s373_s12, 4   ;;  %s454_s6 = smov %s326_s7 }
  0x45   : > { %s455_s7 = smov %s330_s8  ;;  %s456_s8 = smov %s384_s15 }
  0x46   : > { %s457_s9 = smov %s373_s12  ;;  %14 = sbr.rel (!%p12_p12) target bundleno = 4 (0x4), region = 61 }
  0x4b   :  { %143 = vsyncpa [#allocation3], 1 }
  0x4c   :  { %145 = vsyncpa [#allocation3 + $0x1], 1 }
  0x4d   :  { %146 = vsyncpa [#allocation4], 1 }
  0x4e   :  { %148 = vsyncpa [#allocation4 + $0x1], 1 }

// kernel: squeeze.1
= control target key start
LH: loop header
LB: loop body
LE: loop exit
PB: predicated region body
PF: predicated region fallthrough
CT: control target
= control target key end

     0   :  { %s77_s0 = inlined_call_operand.vmem [shape: s32[32], index: 0, kind: input, shape index: {}]   ;;  %s78_s1 = inlined_call_operand.hbm [shape: s32[2,16], index: 1, kind: output, shape index: {}]  }
   0x1   :  { %v6_v0 = vld [vmem:[%s77_s0] sm:$0x1] }
   0x2   :  { %2 = vsyncpa [#allocation1], 0  ;;  %7 = vst [vmem:[#allocation3] sm:$0x1] %v6_v0  ;;  %vm9_vm0 = vcmask 130048   ;;  %s59_s0 = smov 112  }
   0x3   :  { %s60_s8 = smov [#allocation0]  }
   0x4   :  { %s29_s9 = sshll.u32 %s60_s8, 4  ;;  %s30_s9 = int_to_ptr.vmem [resolvable:$true] %s29_s9 }
   0x5   :  { %s37_s10 = scalar_lea.vmem %s30_s9, 32  ;;  %p42_p1 = scmp.lt.s32.totalorder %s30_s9, %s30_s9 }
   0x6   :  { %p38_p0 = scmp.ne.s32.totalorder %s30_s9, %s37_s10  ;;  %p43_p2 = scmp.lt.s32.totalorder %s37_s10, %s37_s10 }
   0x8   :  { %p44_p3 = por %p43_p2, %p42_p1 }
   0x9   :  { %v11_v1 = vld [vmem:[#allocation3] sm:$0x1]  }
   0xa   :  { %v8_v2 = vld [vmem:[#allocation3] sm:$0x1]   ;;  %12 = vrot.lane.b32.xlu0 %v11_v1, %s59_s0  ;;  %p45_p4 = pnand %p44_p3, %p38_p0 }
   0xb   :  { %10 = vst.msk [vmem:[#allocation2] sm:$0x1] %vm9_vm0, %v8_v2  }
  0x7c   :  { %v13_v3 = vpop.permute.xlu0 %12  }
  0x7d   :  { %16 = vst.msk [vmem:[#allocation2 + $0x1] sm:$0x1] %vm9_vm0, %v13_v3  }
  0x84   :  { %v21_v4 = vld [vmem:[#allocation2] sm:$0x3] }
  0x85   :  { %24 = vst [vmem:[#allocation0] sm:$0x3] %v21_v4 }
  0x86   :  { %48 = shalt.err (!%p45_p4)
}
  0x87   :  { %32 = dma.vmem_to_hbm [thread:$0]  %s30_s9, 32, %s78_s1, [#allocation1]  }
  0x88   :  { %57 = dma.done.wait [#allocation1], 32  }
  0x89   :  { %58 = vsyncadd [#allocation1], 4294967264 }
  0x8a   :  { %34 = vsyncpa [#allocation1], 1 }

// kernel: _vq_forward.1
= control target key start
LH: loop header
LB: loop body
LE: loop exit
PB: predicated region body
PF: predicated region fallthrough
CT: control target
= control target key end

     0   :  { %vm40_vm0 = vcmask 261120   ;;  %vm281_vm1 = vcmask 523264   ;;  %s1695_s1 = inlined_call_operand.vmem [shape: f32[64,32], index: 1, kind: input, shape index: {}]   ;;  %s1696_s0 = inlined_call_operand.vmem [shape: f32[128,32], index: 0, kind: input, shape index: {}]   ;;  %s1697_s2 = inlined_call_operand.vmem [shape: f32[1,1,64], index: 2, kind: input, shape index: {}]   ;;  %s1698_s4 = inlined_call_operand.vmem [shape: s32[128,1], index: 4, kind: output, shape index: {1}]   ;;  %s1699_s3 = inlined_call_operand.vmem [shape: f32[128,32], index: 3, kind: output, shape index: {0}]  }
   0x1   :  { %v39_v0 = vld [vmem:[%s1695_s1 + $0x38] sm:$0xff]  ;;  %v38_v1 = vld [vmem:[%s1695_s1 + $0x30] sm:$0xff]  ;;  %v16_v2 = vld [vmem:[%s1696_s0] sm:$0xff] }
   0x2   :  { %999 = vmatprep.subr.msk.mxu0 %vm40_vm0, %v39_v0  ;;  %1039 = vmatprep.subr.mxu1 %v39_v0  ;;  %v37_v3 = vld [vmem:[%s1695_s1 + $0x28] sm:$0xff]  ;;  %v36_v4 = vld [vmem:[%s1695_s1 + $0x20] sm:$0xff]  ;;  %v35_v5 = vld [vmem:[%s1695_s1 + $0x18] sm:$0xff] }
   0x3   :  { %1000 = vmatpush3.xpose.msk.msra.mxu0 %vm40_vm0, %v39_v0  ;;  %1040 = vmatpush3.msra.mxu1 %v39_v0  ;;  %v34_v6 = vld [vmem:[%s1695_s1 + $0x10] sm:$0xff]  ;;  %v33_v7 = vld [vmem:[%s1695_s1 + $0x8] sm:$0xff]  ;;  %v32_v8 = vld [vmem:[%s1695_s1] sm:$0xff] }
   0x4   :  { %1001 = vmatprep.subr.msk.mxu0 %vm40_vm0, %v38_v1  ;;  %1015 = vmatprep.mubr.msk.f32.mxu0 %vm40_vm0, %v16_v2  ;;  %v17_v9 = vld [vmem:[%s1696_s0 + $0x8] sm:$0xff]  ;;  %v18_v10 = vld [vmem:[%s1696_s0 + $0x10] sm:$0xff]  ;;  %v19_v11 = vld [vmem:[%s1696_s0 + $0x18] sm:$0xff] }
   0x5   :  { %1041 = vmatprep.subr.mxu1 %v38_v1  ;;  %v20_v12 = vld [vmem:[%s1696_s0 + $0x20] sm:$0xff]  ;;  %v21_v13 = vld [vmem:[%s1696_s0 + $0x28] sm:$0xff]  ;;  %v22_v14 = vld [vmem:[%s1696_s0 + $0x30] sm:$0xff] }
   0x6   :  { %1042 = vmatpush3.msra.mxu1 %v38_v1  ;;  %v23_v15 = vld [vmem:[%s1696_s0 + $0x38] sm:$0xff]  ;;  %v24_v16 = vld [vmem:[%s1696_s0 + $0x40] sm:$0xff]  ;;  %v25_v17 = vld [vmem:[%s1696_s0 + $0x48] sm:$0xff] }
   0x7   :  { %1002 = vmatpush3.xpose.msk.msra.mxu0 %vm40_vm0, %v38_v1  ;;  %1043 = vmatprep.subr.mxu1 %v37_v3  ;;  %v26_v18 = vld [vmem:[%s1696_s0 + $0x50] sm:$0xff]  ;;  %v27_v19 = vld [vmem:[%s1696_s0 + $0x58] sm:$0xff]  ;;  %v28_v20 = vld [vmem:[%s1696_s0 + $0x60] sm:$0xff] }
   0x8   :  { %1003 = vmatprep.subr.msk.mxu0 %vm40_vm0, %v37_v3  ;;  %1044 = vmatpush3.msra.mxu1 %v37_v3  ;;  %v29_v21 = vld [vmem:[%s1696_s0 + $0x68] sm:$0xff]  ;;  %v30_v22 = vld [vmem:[%s1696_s0 + $0x70] sm:$0xff]  ;;  %v31_v23 = vld [vmem:[%s1696_s0 + $0x78] sm:$0xff] }
   0x9   :  { %1045 = vmatprep.subr.mxu1 %v36_v4  ;;  %v918_v25 = vld [vmem:[%s1697_s2] ss:$0 sm:$0xff] }
   0xa   :  { %1046 = vmatpush3.msra.mxu1 %v36_v4 }
   0xb   :  { %1004 = vmatpush3.xpose.msk.msra.mxu0 %vm40_vm0, %v37_v3  ;;  %1047 = vmatprep.subr.mxu1 %v35_v5 }
   0xc   :  { %1005 = vmatprep.subr.msk.mxu0 %vm40_vm0, %v36_v4  ;;  %1048 = vmatpush3.msra.mxu1 %v35_v5 }
   0xd   :  { %1049 = vmatprep.subr.mxu1 %v34_v6 }
   0xe   :  { %1050 = vmatpush3.msra.mxu1 %v34_v6 }
   0xf   :  { %1006 = vmatpush3.xpose.msk.msra.mxu0 %vm40_vm0, %v36_v4  ;;  %1051 = vmatprep.subr.mxu1 %v33_v7 }
  0x10   :  { %1007 = vmatprep.subr.msk.mxu0 %vm40_vm0, %v35_v5  ;;  %1052 = vmatpush3.msra.mxu1 %v33_v7 }
  0x11   :  { %1053 = vmatprep.subr.mxu1 %v32_v8 }
  0x12   :  { %1054 = vmatpush3.msra.mxu1 %v32_v8 }
  0x13   :  { %1008 = vmatpush3.xpose.msk.msra.mxu0 %vm40_vm0, %v35_v5 }
  0x14   :  { %1009 = vmatprep.subr.msk.mxu0 %vm40_vm0, %v34_v6 }
  0x17   :  { %1010 = vmatpush3.xpose.msk.msra.mxu0 %vm40_vm0, %v34_v6 }
  0x18   :  { %1011 = vmatprep.subr.msk.mxu0 %vm40_vm0, %v33_v7 }
  0x1b   :  { %1012 = vmatpush3.xpose.msk.msra.mxu0 %vm40_vm0, %v33_v7 }
  0x1c   :  { %1013 = vmatprep.subr.msk.mxu0 %vm40_vm0, %v32_v8 }
  0x1f   :  { %1014 = vmatpush3.xpose.msk.msra.mxu0 %vm40_vm0, %v32_v8 }
  0x22   :  { %1016 = vmatmul.mubr.msk.f32.vlgmr.msra.gmra.mxu0 %vm40_vm0, %v17_v9  ;;  %v330_v9 = vlaneseq }
  0x23   :  { %1018 = vmatprep.mubr.msk.f32.mxu0 %vm40_vm0, %v18_v10 }
  0x24   :  { %v1277_v10 = vand.u32 127, %v330_v9 }
  0x26   :  { %1019 = vmatmul.mubr.msk.f32.gmra.mxu0 %vm40_vm0, %v19_v11 }
  0x27   :  { %1021 = vmatprep.mubr.msk.f32.mxu0 %vm40_vm0, %v20_v12 }
  0x2a   :  { %1022 = vmatmul.mubr.msk.f32.gmra.mxu0 %vm40_vm0, %v21_v13 }
  0x2b   :  { %1024 = vmatprep.mubr.msk.f32.mxu0 %vm40_vm0, %v22_v14 }
  0x2e   :  { %1025 = vmatmul.mubr.msk.f32.gmra.mxu0 %vm40_vm0, %v23_v15 }
  0x2f   :  { %1027 = vmatprep.mubr.msk.f32.mxu0 %vm40_vm0, %v24_v16 }
  0x32   :  { %1028 = vmatmul.mubr.msk.f32.gmra.mxu0 %vm40_vm0, %v25_v17 }
  0x33   :  { %1030 = vmatprep.mubr.msk.f32.mxu0 %vm40_vm0, %v26_v18 }
  0x36   :  { %1031 = vmatmul.mubr.msk.f32.gmra.mxu0 %vm40_vm0, %v27_v19 }
  0x37   :  { %1033 = vmatprep.mubr.msk.f32.mxu0 %vm40_vm0, %v28_v20 }
  0x3a   :  { %1034 = vmatmul.mubr.msk.f32.gmra.mxu0 %vm40_vm0, %v29_v21 }
  0x3b   :  { %1036 = vmatprep.mubr.msk.f32.mxu0 %vm40_vm0, %v30_v22 }
  0x3e   :  { %1037 = vmatmul.mubr.msk.f32.gmra.mxu0 %vm40_vm0, %v31_v23 }
  0xe2   :  { %v1017_v24 = vpop.f32.mrf.mxu0 }
  0xe3   :  { %v1215_v29 = vsub.f32 %v1017_v24, %v918_v25 }
  0xe4   :  { %v179_v26 = vpop.f32.mrf.mxu0 }
  0xe5   :  { %v1213_v27 = vsub.f32 %v179_v26, %v918_v25  ;;  %v285_v35 = vsel %vm281_vm1, %v1215_v29, -inf }
  0xe6   :  { %v1020_v28 = vpop.f32.mrf.mxu0 }
  0xe7   :  { %v282_v30 = vsel %vm281_vm1, %v1213_v27, -inf  ;;  %v1221_v34 = vsub.f32 %v1020_v28, %v918_v25 }
  0xe8   :  { %283 = vmax.xlane.f32.xlu0 %v282_v30  ;;  %v189_v31 = vpop.f32.mrf.mxu0 }
  0xe9   :  { %v1219_v32 = vsub.f32 %v189_v31, %v918_v25  ;;  %v291_v41 = vsel %vm281_vm1, %v1221_v34, -inf }
  0xea   :  { %v1023_v33 = vpop.f32.mrf.mxu0 }
  0xeb   :  { %v288_v36 = vsel %vm281_vm1, %v1219_v32, -inf  ;;  %v1229_v40 = vsub.f32 %v1023_v33, %v918_v25 }
  0xec   :  { %286 = vmax.xlane.f32.xlu0 %v285_v35  ;;  %289 = vmax.xlane.f32.xlu1 %v288_v36  ;;  %v199_v37 = vpop.f32.mrf.mxu0 }
  0xed   :  { %v1227_v38 = vsub.f32 %v199_v37, %v918_v25  ;;  %v297_v47 = vsel %vm281_vm1, %v1229_v40, -inf }
  0xee   :  { %v1026_v39 = vpop.f32.mrf.mxu0 }
  0xef   :  { %v294_v42 = vsel %vm281_vm1, %v1227_v38, -inf  ;;  %v1237_v46 = vsub.f32 %v1026_v39, %v918_v25 }
  0xf0   :  { %292 = vmax.xlane.f32.xlu1 %v291_v41  ;;  %295 = vmax.xlane.f32.xlu0 %v294_v42  ;;  %v209_v43 = vpop.f32.mrf.mxu0 }
  0xf1   :  { %v1235_v44 = vsub.f32 %v209_v43, %v918_v25  ;;  %v303_v53 = vsel %vm281_vm1, %v1237_v46, -inf }
  0xf2   :  { %v1029_v45 = vpop.f32.mrf.mxu0 }
  0xf3   :  { %v300_v48 = vsel %vm281_vm1, %v1235_v44, -inf  ;;  %v1245_v52 = vsub.f32 %v1029_v45, %v918_v25 }
  0xf4   :  { %298 = vmax.xlane.f32.xlu1 %v297_v47  ;;  %301 = vmax.xlane.f32.xlu0 %v300_v48  ;;  %v219_v49 = vpop.f32.mrf.mxu0 }
  0xf5   :  { %v1243_v50 = vsub.f32 %v219_v49, %v918_v25  ;;  %v309_v59 = vsel %vm281_vm1, %v1245_v52, -inf }
  0xf6   :  { %v1032_v51 = vpop.f32.mrf.mxu0 }
  0xf7   :  { %v306_v54 = vsel %vm281_vm1, %v1243_v50, -inf  ;;  %v1253_v58 = vsub.f32 %v1032_v51, %v918_v25 }
  0xf8   :  { %304 = vmax.xlane.f32.xlu1 %v303_v53  ;;  %307 = vmax.xlane.f32.xlu0 %v306_v54  ;;  %v229_v55 = vpop.f32.mrf.mxu0 }
  0xf9   :  { %v1251_v56 = vsub.f32 %v229_v55, %v918_v25  ;;  %v315_v1 = vsel %vm281_vm1, %v1253_v58, -inf }
  0xfa   :  { %v1035_v57 = vpop.f32.mrf.mxu0 }
  0xfb   :  { %v312_v60 = vsel %vm281_vm1, %v1251_v56, -inf  ;;  %v1261_v0 = vsub.f32 %v1035_v57, %v918_v25 }
  0xfc   :  { %310 = vmax.xlane.f32.xlu1 %v309_v59  ;;  %313 = vmax.xlane.f32.xlu0 %v312_v60  ;;  %v239_v61 = vpop.f32.mrf.mxu0 }
  0xfd   :  { %v1259_v62 = vsub.f32 %v239_v61, %v918_v25  ;;  %v321_v6 = vsel %vm281_vm1, %v1261_v0, -inf }
  0xfe   :  { %v1038_v63 = vpop.f32.mrf.mxu0 }
  0xff   :  { %v318_v2 = vsel %vm281_vm1, %v1259_v62, -inf  ;;  %v1269_v5 = vsub.f32 %v1038_v63, %v918_v25 }
 0x100   :  { %316 = vmax.xlane.f32.xlu1 %v315_v1  ;;  %319 = vmax.xlane.f32.xlu0 %v318_v2  ;;  %v249_v3 = vpop.f32.mrf.mxu0 }
 0x101   :  { %v1267_v4 = vsub.f32 %v249_v3, %v918_v25  ;;  %v327_v8 = vsel %vm281_vm1, %v1269_v5, -inf }
 0x103   :  { %v324_v7 = vsel %vm281_vm1, %v1267_v4, -inf }
 0x104   :  { %322 = vmax.xlane.f32.xlu1 %v321_v6  ;;  %325 = vmax.xlane.f32.xlu0 %v324_v7 }
 0x108   :  { %328 = vmax.xlane.f32.xlu1 %v327_v8 }
 0x171   :  { %v284_v11 = vpop.xlane.xlu0 %283 }
 0x172   :  { %vm332_vm2 = vcmp.eq.f32.partialorder %v1213_v27, %v284_v11 }
 0x173   :  { %v348_v12 = vsel %vm332_vm2, %v1277_v10, 64 }
 0x174   :  { %v1282_v13 = vsel %vm281_vm1, %v348_v12, 2147483647 }
 0x175   :  { %v287_v14 = vpop.xlane.xlu0 %286  ;;  %v290_v15 = vpop.xlane.xlu1 %289  ;;  %v366_v16 = vshra.s32 %v1282_v13, 16 }
 0x176   :  { %vm333_vm3 = vcmp.eq.f32.partialorder %v1215_v29, %v287_v14  ;;  %vm334_vm4 = vcmp.eq.f32.partialorder %v1219_v32, %v290_v15 }
 0x177   :  { %v349_v17 = vsel %vm333_vm3, %v1277_v10, 64  ;;  %v350_v18 = vsel %vm334_vm4, %v1277_v10, 64  ;;  %v1289_v19 = vcvt.s32.f32 %v366_v16 }
 0x178   :  { %v1292_v20 = vsel %vm281_vm1, %v349_v17, 2147483647  ;;  %v1295_v21 = vsel %vm281_vm1, %v350_v18, 2147483647 }
 0x179   :  { %v293_v22 = vpop.xlane.xlu1 %292  ;;  %v296_v23 = vpop.xlane.xlu0 %295  ;;  %369 = vmin.xlane.f32.xlu0 %v1289_v19  ;;  %v381_v24 = vshra.s32 %v1292_v20, 16  ;;  %v396_v25 = vshra.s32 %v1295_v21, 16 }
 0x17a   :  { %vm335_vm5 = vcmp.eq.f32.partialorder %v1221_v34, %v293_v22  ;;  %vm336_vm6 = vcmp.eq.f32.partialorder %v1227_v38, %v296_v23 }
 0x17b   :  { %v351_v26 = vsel %vm335_vm5, %v1277_v10, 64  ;;  %v352_v27 = vsel %vm336_vm6, %v1277_v10, 64  ;;  %v1304_v28 = vcvt.s32.f32 %v381_v24  ;;  %v1306_v29 = vcvt.s32.f32 %v396_v25 }
 0x17c   :  { %v1309_v30 = vsel %vm281_vm1, %v351_v26, 2147483647  ;;  %v1312_v31 = vsel %vm281_vm1, %v352_v27, 2147483647 }
 0x17d   :  { %v299_v32 = vpop.xlane.xlu1 %298  ;;  %v302_v33 = vpop.xlane.xlu0 %301  ;;  %384 = vmin.xlane.f32.xlu1 %v1304_v28  ;;  %399 = vmin.xlane.f32.xlu0 %v1306_v29  ;;  %v411_v34 = vshra.s32 %v1309_v30, 16  ;;  %v426_v35 = vshra.s32 %v1312_v31, 16 }
 0x17e   :  { %vm337_vm7 = vcmp.eq.f32.partialorder %v1229_v40, %v299_v32  ;;  %vm338_vm8 = vcmp.eq.f32.partialorder %v1235_v44, %v302_v33 }
 0x17f   :  { %v353_v36 = vsel %vm337_vm7, %v1277_v10, 64  ;;  %v354_v37 = vsel %vm338_vm8, %v1277_v10, 64  ;;  %v1322_v38 = vcvt.s32.f32 %v411_v34  ;;  %v1324_v39 = vcvt.s32.f32 %v426_v35 }
 0x180   :  { %v1327_v41 = vsel %vm281_vm1, %v353_v36, 2147483647  ;;  %v1330_v42 = vsel %vm281_vm1, %v354_v37, 2147483647 }
 0x181   :  { %v305_v43 = vpop.xlane.xlu1 %304  ;;  %v308_v45 = vpop.xlane.xlu0 %307  ;;  %414 = vmin.xlane.f32.xlu1 %v1322_v38  ;;  %429 = vmin.xlane.f32.xlu0 %v1324_v39  ;;  %v441_v40 = vshra.s32 %v1327_v41, 16  ;;  %v456_v44 = vshra.s32 %v1330_v42, 16 }
 0x182   :  { %vm339_vm9 = vcmp.eq.f32.partialorder %v1237_v46, %v305_v43  ;;  %vm340_vm10 = vcmp.eq.f32.partialorder %v1243_v50, %v308_v45  ;;  %v380_v45 = vand.u32 65535, %v1292_v20 }
 0x183   :  { %v355_v47 = vsel %vm339_vm9, %v1277_v10, 64  ;;  %v356_v48 = vsel %vm340_vm10, %v1277_v10, 64  ;;  %v1340_v49 = vcvt.s32.f32 %v441_v40  ;;  %v1342_v51 = vcvt.s32.f32 %v456_v44 }
 0x184   :  { %v1345_v53 = vsel %vm281_vm1, %v355_v47, 2147483647  ;;  %v1348_v54 = vsel %vm281_vm1, %v356_v48, 2147483647  ;;  %v395_v40 = vand.u32 65535, %v1295_v21 }
 0x185   :  { %v311_v55 = vpop.xlane.xlu1 %310  ;;  %v314_v57 = vpop.xlane.xlu0 %313  ;;  %444 = vmin.xlane.f32.xlu1 %v1340_v49  ;;  %459 = vmin.xlane.f32.xlu0 %v1342_v51  ;;  %v471_v46 = vshra.s32 %v1345_v53, 16  ;;  %v486_v50 = vshra.s32 %v1348_v54, 16 }
 0x186   :  { %vm341_vm11 = vcmp.eq.f32.partialorder %v1245_v52, %v311_v55  ;;  %vm342_vm12 = vcmp.eq.f32.partialorder %v1251_v56, %v314_v57  ;;  %v382_v55 = vcvt.s32.f32 %v380_v45  ;;  %v397_v57 = vcvt.s32.f32 %v395_v40 }
 0x187   :  { %v357_v59 = vsel %vm341_vm11, %v1277_v10, 64  ;;  %v358_v60 = vsel %vm342_vm12, %v1277_v10, 64  ;;  %v1358_v61 = vcvt.s32.f32 %v471_v46  ;;  %v1360_v63 = vcvt.s32.f32 %v486_v50 }
 0x188   :  { %v1363_v1 = vsel %vm281_vm1, %v357_v59, 2147483647  ;;  %v1366_v2 = vsel %vm281_vm1, %v358_v60, 2147483647  ;;  %v425_v46 = vand.u32 65535, %v1312_v31  ;;  %v455_v31 = vand.u32 65535, %v1330_v42 }
 0x189   :  { %v317_v3 = vpop.xlane.xlu1 %316  ;;  %v320_v6 = vpop.xlane.xlu0 %319  ;;  %474 = vmin.xlane.f32.xlu1 %v1358_v61  ;;  %489 = vmin.xlane.f32.xlu0 %v1360_v63  ;;  %v501_v52 = vshra.s32 %v1363_v1, 16  ;;  %v516_v56 = vshra.s32 %v1366_v2, 16  ;;  %v485_v42 = vand.u32 65535, %v1348_v54  ;;  %v515_v54 = vand.u32 65535, %v1366_v2 }
 0x18a   :  { %vm343_vm13 = vcmp.eq.f32.partialorder %v1253_v58, %v317_v3  ;;  %vm344_vm14 = vcmp.eq.f32.partialorder %v1259_v62, %v320_v6  ;;  %v427_v60 = vcvt.s32.f32 %v425_v46 }
 0x18b   :  { %v359_v7 = vsel %vm343_vm13, %v1277_v10, 64  ;;  %v360_v8 = vsel %vm344_vm14, %v1277_v10, 64  ;;  %v1376_v9 = vcvt.s32.f32 %v501_v52  ;;  %v1378_v11 = vcvt.s32.f32 %v516_v56 }
 0x18c   :  { %v1381_v12 = vsel %vm281_vm1, %v359_v7, 2147483647  ;;  %v1384_v14 = vsel %vm281_vm1, %v360_v8, 2147483647  ;;  %v457_v56 = vcvt.s32.f32 %v455_v31 }
 0x18d   :  { %v323_v15 = vpop.xlane.xlu1 %322  ;;  %504 = vmin.xlane.f32.xlu1 %v1376_v9  ;;  %519 = vmin.xlane.f32.xlu0 %v1378_v11  ;;  %v326_v58 = vpop.xlane.xlu0 %325  ;;  %v531_v62 = vshra.s32 %v1381_v12, 16  ;;  %v546_v16 = vshra.s32 %v1384_v14, 16  ;;  %v545_v2 = vand.u32 65535, %v1384_v14 }
 0x18e   :  { %vm345_vm15 = vcmp.eq.f32.partialorder %v1261_v0, %v323_v15  ;;  %vm346_vm2 = vcmp.eq.f32.partialorder %v1267_v4, %v326_v58  ;;  %v487_v58 = vcvt.s32.f32 %v485_v42 }
 0x18f   :  { %v361_v17 = vsel %vm345_vm15, %v1277_v10, 64  ;;  %v362_v18 = vsel %vm346_vm2, %v1277_v10, 64  ;;  %v1394_v22 = vcvt.s32.f32 %v531_v62  ;;  %v1396_v23 = vcvt.s32.f32 %v546_v16 }
 0x190   :  { %v1399_v24 = vsel %vm281_vm1, %v361_v17, 2147483647  ;;  %v1402_v25 = vsel %vm281_vm1, %v362_v18, 2147483647  ;;  %v517_v18 = vcvt.s32.f32 %v515_v54 }
 0x191   :  { %534 = vmin.xlane.f32.xlu1 %v1394_v22  ;;  %v329_v26 = vpop.xlane.xlu1 %328  ;;  %549 = vmin.xlane.f32.xlu0 %v1396_v23  ;;  %v561_v0 = vshra.s32 %v1399_v24, 16  ;;  %v576_v4 = vshra.s32 %v1402_v25, 16  ;;  %v575_v14 = vand.u32 65535, %v1402_v25 }
 0x192   :  { %vm347_vm3 = vcmp.eq.f32.partialorder %v1269_v5, %v329_v26  ;;  %v365_v5 = vand.u32 65535, %v1282_v13  ;;  %v410_v13 = vand.u32 65535, %v1309_v30  ;;  %v440_v30 = vand.u32 65535, %v1327_v41 }
 0x193   :  { %v363_v27 = vsel %vm347_vm3, %v1277_v10, 64  ;;  %v1410_v32 = vcvt.s32.f32 %v561_v0  ;;  %v1412_v33 = vcvt.s32.f32 %v576_v4  ;;  %v470_v41 = vand.u32 65535, %v1345_v53 }
 0x194   :  { %v1415_v34 = vsel %vm281_vm1, %v363_v27, 2147483647  ;;  %v367_v43 = vcvt.s32.f32 %v365_v5  ;;  %v412_v59 = vcvt.s32.f32 %v410_v13  ;;  %v442_v52 = vcvt.s32.f32 %v440_v30 }
 0x195   :  { %564 = vmin.xlane.f32.xlu1 %v1410_v32  ;;  %579 = vmin.xlane.f32.xlu0 %v1412_v33  ;;  %v591_v35 = vshra.s32 %v1415_v34, 16  ;;  %v472_v15 = vcvt.s32.f32 %v470_v41  ;;  %v500_v53 = vand.u32 65535, %v1363_v1  ;;  %v530_v1 = vand.u32 65535, %v1381_v12 }
 0x196   :  { %v547_v27 = vcvt.s32.f32 %v545_v2  ;;  %v560_v12 = vand.u32 65535, %v1399_v24  ;;  %v577_v45 = vcvt.s32.f32 %v575_v14  ;;  %v590_v24 = vand.u32 65535, %v1415_v34 }
 0x197   :  { %v1420_v36 = vcvt.s32.f32 %v591_v35  ;;  %v502_v17 = vcvt.s32.f32 %v500_v53  ;;  %v532_v4 = vcvt.s32.f32 %v530_v1 }
 0x198   :  { %v592_v40 = vcvt.s32.f32 %v590_v24 }
 0x199   :  { %594 = vmin.xlane.f32.xlu1 %v1420_v36 }
 0x202   :  { %v1424_v37 = vpop.xlane.xlu0 %369 }
 0x203   :  { %vm371_vm4 = vcmp.eq.f32.partialorder %v1289_v19, %v1424_v37  ;;  %v376_v34 = vcvt.f32.s32 %v1424_v37 }
 0x204   :  { %v372_v44 = vsel %vm371_vm4, %v367_v43, inf  ;;  %v562_v43 = vcvt.s32.f32 %v560_v12 }
 0x205   :  { %373 = vmin.xlane.f32.xlu0 %v372_v44 }
 0x206   :  { %v1430_v47 = vpop.xlane.xlu1 %384  ;;  %v1432_v48 = vpop.xlane.xlu0 %399 }
 0x207   :  { %vm386_vm5 = vcmp.eq.f32.partialorder %v1304_v28, %v1430_v47  ;;  %vm401_vm6 = vcmp.eq.f32.partialorder %v1306_v29, %v1432_v48 }
 0x208   :  { %v387_v20 = vsel %vm386_vm5, %v382_v55, inf  ;;  %v402_v19 = vsel %vm401_vm6, %v397_v57, inf  ;;  %v391_v55 = vcvt.f32.s32 %v1430_v47  ;;  %v377_v57 = vshll.u32 %v376_v34, 16 }
 0x209   :  { %388 = vmin.xlane.f32.xlu1 %v387_v20  ;;  %403 = vmin.xlane.f32.xlu0 %v402_v19  ;;  %vm604_vm6 = vcmask 7168  }
 0x20a   :  { %v1440_v21 = vpop.xlane.xlu1 %414  ;;  %v1442_v50 = vpop.xlane.xlu0 %429  ;;  %v392_v20 = vshll.u32 %v391_v55, 16 }
 0x20b   :  { %vm416_vm7 = vcmp.eq.f32.partialorder %v1322_v38, %v1440_v21  ;;  %vm431_vm8 = vcmp.eq.f32.partialorder %v1324_v39, %v1442_v50  ;;  %v421_v19 = vcvt.f32.s32 %v1440_v21 }
 0x20c   :  { %v417_v28 = vsel %vm416_vm7, %v412_v59, inf  ;;  %v432_v29 = vsel %vm431_vm8, %v427_v60, inf  ;;  %v436_v59 = vcvt.f32.s32 %v1442_v50 }
 0x20d   :  { %418 = vmin.xlane.f32.xlu1 %v417_v28  ;;  %433 = vmin.xlane.f32.xlu0 %v432_v29  ;;  %v422_v21 = vshll.u32 %v421_v19, 16 }
 0x20e   :  { %v1450_v3 = vpop.xlane.xlu1 %444  ;;  %v1452_v6 = vpop.xlane.xlu0 %459  ;;  %v437_v50 = vshll.u32 %v436_v59, 16 }
 0x20f   :  { %vm446_vm9 = vcmp.eq.f32.partialorder %v1340_v49, %v1450_v3  ;;  %vm461_vm10 = vcmp.eq.f32.partialorder %v1342_v51, %v1452_v6 }
 0x210   :  { %v447_v38 = vsel %vm446_vm9, %v442_v52, inf  ;;  %v462_v39 = vsel %vm461_vm10, %v457_v56, inf  ;;  %v451_v52 = vcvt.f32.s32 %v1450_v3  ;;  %v466_v56 = vcvt.f32.s32 %v1452_v6 }
 0x211   :  { %448 = vmin.xlane.f32.xlu1 %v447_v38  ;;  %463 = vmin.xlane.f32.xlu0 %v462_v39 }
 0x212   :  { %v1460_v7 = vpop.xlane.xlu1 %474  ;;  %v1462_v8 = vpop.xlane.xlu0 %489  ;;  %v452_v53 = vshll.u32 %v451_v52, 16  ;;  %v467_v54 = vshll.u32 %v466_v56, 16 }
 0x213   :  { %vm476_vm11 = vcmp.eq.f32.partialorder %v1358_v61, %v1460_v7  ;;  %vm491_vm12 = vcmp.eq.f32.partialorder %v1360_v63, %v1462_v8 }
 0x214   :  { %v477_v49 = vsel %vm476_vm11, %v472_v15, inf  ;;  %v492_v51 = vsel %vm491_vm12, %v487_v58, inf }
 0x215   :  { %478 = vmin.xlane.f32.xlu1 %v477_v49  ;;  %493 = vmin.xlane.f32.xlu0 %v492_v51  ;;  %v481_v49 = vcvt.f32.s32 %v1460_v7  ;;  %v496_v51 = vcvt.f32.s32 %v1462_v8 }
 0x216   :  { %v1470_v62 = vpop.xlane.xlu1 %504  ;;  %v1472_v16 = vpop.xlane.xlu0 %519 }
 0x217   :  { %vm506_vm13 = vcmp.eq.f32.partialorder %v1376_v9, %v1470_v62  ;;  %vm521_vm14 = vcmp.eq.f32.partialorder %v1378_v11, %v1472_v16  ;;  %v511_v12 = vcvt.f32.s32 %v1470_v62  ;;  %v526_v14 = vcvt.f32.s32 %v1472_v16 }
 0x218   :  { %v507_v61 = vsel %vm506_vm13, %v502_v17, inf  ;;  %v522_v63 = vsel %vm521_vm14, %v517_v18, inf }
 0x219   :  { %508 = vmin.xlane.f32.xlu1 %v507_v61  ;;  %523 = vmin.xlane.f32.xlu0 %v522_v63 }
 0x21a   :  { %v1480_v26 = vpop.xlane.xlu1 %534  ;;  %v1482_v0 = vpop.xlane.xlu0 %549 }
 0x21b   :  { %vm536_vm15 = vcmp.eq.f32.partialorder %v1394_v22, %v1480_v26  ;;  %vm551_vm2 = vcmp.eq.f32.partialorder %v1396_v23, %v1482_v0  ;;  %v556_v34 = vcvt.f32.s32 %v1482_v0 }
 0x21c   :  { %v537_v9 = vsel %vm536_vm15, %v532_v4, inf  ;;  %v552_v11 = vsel %vm551_vm2, %v547_v27, inf  ;;  %v482_v4 = vshll.u32 %v481_v49, 16  ;;  %v497_v27 = vshll.u32 %v496_v51, 16 }
 0x21d   :  { %538 = vmin.xlane.f32.xlu1 %v537_v9  ;;  %553 = vmin.xlane.f32.xlu0 %v552_v11  ;;  %v557_v19 = vshll.u32 %v556_v34, 16 }
 0x21e   :  { %v1490_v35 = vpop.xlane.xlu1 %564  ;;  %v1492_v5 = vpop.xlane.xlu0 %579 }
 0x21f   :  { %vm566_vm3 = vcmp.eq.f32.partialorder %v1410_v32, %v1490_v35  ;;  %vm581_vm4 = vcmp.eq.f32.partialorder %v1412_v33, %v1492_v5  ;;  %v406_v33 = vcvt.f32.s32 %v1432_v48  ;;  %v1080_v48 = vmov 0.0  }
 0x220   :  { %v567_v22 = vsel %vm566_vm3, %v562_v43, inf  ;;  %v582_v23 = vsel %vm581_vm4, %v577_v45, inf  ;;  %v571_v59 = vcvt.f32.s32 %v1490_v35 }
 0x221   :  { %568 = vmin.xlane.f32.xlu1 %v567_v22  ;;  %583 = vmin.xlane.f32.xlu0 %v582_v23  ;;  %v407_v30 = vshll.u32 %v406_v33, 16  ;;  %v512_v23 = vshll.u32 %v511_v12, 16 }
 0x222   :  { %v1499_v25 = vpop.xlane.xlu1 %594 }
 0x223   :  { %vm596_vm5 = vcmp.eq.f32.partialorder %v1420_v36, %v1499_v25 }
 0x224   :  { %v597_v44 = vsel %vm596_vm5, %v592_v40, inf  ;;  %v527_v40 = vshll.u32 %v526_v14, 16 }
 0x225   :  { %598 = vmin.xlane.f32.xlu1 %v597_v44  ;;  %v541_v44 = vcvt.f32.s32 %v1480_v26 }
 0x28e   :  { %v374_v32 = vpop.xlane.xlu0 %373 }
 0x28f   :  { %v375_v13 = vcvt.f32.s32 %v374_v32 }
 0x291   :  { %v378_v46 = vadd.s32 %v377_v57, %v375_v13 }
 0x292   :  { %v389_v60 = vpop.xlane.xlu1 %388  ;;  %v404_v36 = vpop.xlane.xlu0 %403 }
 0x293   :  { %605 = vst.msk [vmem:[%s1698_s4] sm:$0xff] %vm604_vm6, %v378_v46  ;;  %v390_v37 = vcvt.f32.s32 %v389_v60  ;;  %v405_v47 = vcvt.f32.s32 %v404_v36  ;;  %vm621_vm7 = vcmp.eq.s32.totalorder %v1277_v10, %v378_v46  ;;  %v586_v60 = vcvt.f32.s32 %v1492_v5 }
 0x294   :  { %v919_v31 = vsel %vm621_vm7, 1.0, %v1080_v48 }
 0x295   :  { %v393_v28 = vadd.s32 %v392_v20, %v390_v37  ;;  %v408_v29 = vadd.s32 %v407_v30, %v405_v47  ;;  %1055 = vmatprep.mubr.msk.f32.mxu1 %vm281_vm1, %v919_v31  ;;  %v542_v20 = vshll.u32 %v541_v44, 16 }
 0x296   :  { %v419_v41 = vpop.xlane.xlu1 %418  ;;  %v434_v42 = vpop.xlane.xlu0 %433 }
 0x297   :  { %606 = vst.msk [vmem:[%s1698_s4 + $0x8] sm:$0xff] %vm604_vm6, %v393_v28  ;;  %607 = vst.msk [vmem:[%s1698_s4 + $0x10] sm:$0xff] %vm604_vm6, %v408_v29  ;;  %v420_v38 = vcvt.f32.s32 %v419_v41  ;;  %v435_v39 = vcvt.f32.s32 %v434_v42  ;;  %vm622_vm8 = vcmp.eq.s32.totalorder %v1277_v10, %v393_v28  ;;  %vm623_vm9 = vcmp.eq.s32.totalorder %v1277_v10, %v408_v29 }
 0x298   :  { %v920_v3 = vsel %vm622_vm8, 1.0, %v1080_v48  ;;  %v921_v6 = vsel %vm623_vm9, 1.0, %v1080_v48  ;;  %v572_v29 = vshll.u32 %v571_v59, 16 }
 0x299   :  { %v423_v15 = vadd.s32 %v422_v21, %v420_v38  ;;  %v438_v58 = vadd.s32 %v437_v50, %v435_v39  ;;  %1056 = vmatmul.mubr.msk.f32.vlgmr.msra.gmra.mxu1 %vm281_vm1, %v920_v3  ;;  %v587_v21 = vshll.u32 %v586_v60, 16  ;;  %v601_v50 = vcvt.f32.s32 %v1499_v25 }
 0x29a   :  { %v449_v17 = vpop.xlane.xlu1 %448  ;;  %1058 = vmatprep.mubr.msk.f32.mxu1 %vm281_vm1, %v921_v6  ;;  %v464_v18 = vpop.xlane.xlu0 %463 }
 0x29b   :  { %608 = vst.msk [vmem:[%s1698_s4 + $0x18] sm:$0xff] %vm604_vm6, %v423_v15  ;;  %609 = vst.msk [vmem:[%s1698_s4 + $0x20] sm:$0xff] %vm604_vm6, %v438_v58  ;;  %v450_v1 = vcvt.f32.s32 %v449_v17  ;;  %v465_v2 = vcvt.f32.s32 %v464_v18  ;;  %vm624_vm10 = vcmp.eq.s32.totalorder %v1277_v10, %v423_v15  ;;  %vm625_vm11 = vcmp.eq.s32.totalorder %v1277_v10, %v438_v58 }
 0x29c   :  { %v922_v7 = vsel %vm624_vm10, 1.0, %v1080_v48  ;;  %v923_v8 = vsel %vm625_vm11, 1.0, %v1080_v48  ;;  %v602_v15 = vshll.u32 %v601_v50, 16 }
 0x29d   :  { %v453_v61 = vadd.s32 %v452_v53, %v450_v1  ;;  %v468_v63 = vadd.s32 %v467_v54, %v465_v2  ;;  %1059 = vmatmul.mubr.msk.f32.gmra.mxu1 %vm281_vm1, %v922_v7 }
 0x29e   :  { %v479_v9 = vpop.xlane.xlu1 %478  ;;  %1061 = vmatprep.mubr.msk.f32.mxu1 %vm281_vm1, %v923_v8  ;;  %v494_v11 = vpop.xlane.xlu0 %493 }
 0x29f   :  { %610 = vst.msk [vmem:[%s1698_s4 + $0x28] sm:$0xff] %vm604_vm6, %v453_v61  ;;  %611 = vst.msk [vmem:[%s1698_s4 + $0x30] sm:$0xff] %vm604_vm6, %v468_v63  ;;  %v480_v43 = vcvt.f32.s32 %v479_v9  ;;  %v495_v45 = vcvt.f32.s32 %v494_v11  ;;  %vm626_vm12 = vcmp.eq.s32.totalorder %v1277_v10, %v453_v61  ;;  %vm627_vm13 = vcmp.eq.s32.totalorder %v1277_v10, %v468_v63 }
 0x2a0   :  { %v924_v62 = vsel %vm626_vm12, 1.0, %v1080_v48  ;;  %v925_v16 = vsel %vm627_vm13, 1.0, %v1080_v48 }
 0x2a1   :  { %v483_v24 = vadd.s32 %v482_v4, %v480_v43  ;;  %v498_v22 = vadd.s32 %v497_v27, %v495_v45  ;;  %1062 = vmatmul.mubr.msk.f32.gmra.mxu1 %vm281_vm1, %v924_v62 }
 0x2a2   :  { %v509_v55 = vpop.xlane.xlu1 %508  ;;  %1064 = vmatprep.mubr.msk.f32.mxu1 %vm281_vm1, %v925_v16  ;;  %v524_v32 = vpop.xlane.xlu0 %523 }
 0x2a3   :  { %612 = vst.msk [vmem:[%s1698_s4 + $0x38] sm:$0xff] %vm604_vm6, %v483_v24  ;;  %613 = vst.msk [vmem:[%s1698_s4 + $0x40] sm:$0xff] %vm604_vm6, %v498_v22  ;;  %v510_v57 = vcvt.f32.s32 %v509_v55  ;;  %v525_v33 = vcvt.f32.s32 %v524_v32  ;;  %vm628_vm14 = vcmp.eq.s32.totalorder %v1277_v10, %v483_v24  ;;  %vm629_vm15 = vcmp.eq.s32.totalorder %v1277_v10, %v498_v22 }
 0x2a4   :  { %v926_v26 = vsel %vm628_vm14, 1.0, %v1080_v48  ;;  %v927_v0 = vsel %vm629_vm15, 1.0, %v1080_v48 }
 0x2a5   :  { %v513_v13 = vadd.s32 %v512_v23, %v510_v57  ;;  %v528_v46 = vadd.s32 %v527_v40, %v525_v33  ;;  %1065 = vmatmul.mubr.msk.f32.gmra.mxu1 %vm281_vm1, %v926_v26 }
 0x2a6   :  { %v539_v36 = vpop.xlane.xlu1 %538  ;;  %1067 = vmatprep.mubr.msk.f32.mxu1 %vm281_vm1, %v927_v0  ;;  %v554_v30 = vpop.xlane.xlu0 %553 }
 0x2a7   :  { %614 = vst.msk [vmem:[%s1698_s4 + $0x48] sm:$0xff] %vm604_vm6, %v513_v13  ;;  %615 = vst.msk [vmem:[%s1698_s4 + $0x50] sm:$0xff] %vm604_vm6, %v528_v46  ;;  %v540_v37 = vcvt.f32.s32 %v539_v36  ;;  %v555_v47 = vcvt.f32.s32 %v554_v30  ;;  %vm630_vm2 = vcmp.eq.s32.totalorder %v1277_v10, %v513_v13  ;;  %vm631_vm3 = vcmp.eq.s32.totalorder %v1277_v10, %v528_v46 }
 0x2a8   :  { %v928_v35 = vsel %vm630_vm2, 1.0, %v1080_v48  ;;  %v929_v5 = vsel %vm631_vm3, 1.0, %v1080_v48 }
 0x2a9   :  { %v543_v31 = vadd.s32 %v542_v20, %v540_v37  ;;  %v558_v28 = vadd.s32 %v557_v19, %v555_v47  ;;  %1068 = vmatmul.mubr.msk.f32.gmra.mxu1 %vm281_vm1, %v928_v35 }
 0x2aa   :  { %v569_v52 = vpop.xlane.xlu1 %568  ;;  %1070 = vmatprep.mubr.msk.f32.mxu1 %vm281_vm1, %v929_v5  ;;  %v584_v56 = vpop.xlane.xlu0 %583 }
 0x2ab   :  { %616 = vst.msk [vmem:[%s1698_s4 + $0x58] sm:$0xff] %vm604_vm6, %v543_v31  ;;  %617 = vst.msk [vmem:[%s1698_s4 + $0x60] sm:$0xff] %vm604_vm6, %v558_v28  ;;  %v570_v41 = vcvt.f32.s32 %v569_v52  ;;  %v585_v42 = vcvt.f32.s32 %v584_v56  ;;  %vm632_vm4 = vcmp.eq.s32.totalorder %v1277_v10, %v543_v31  ;;  %vm633_vm5 = vcmp.eq.s32.totalorder %v1277_v10, %v558_v28 }
 0x2ac   :  { %v930_v25 = vsel %vm632_vm4, 1.0, %v1080_v48  ;;  %v931_v38 = vsel %vm633_vm5, 1.0, %v1080_v48 }
 0x2ad   :  { %v573_v39 = vadd.s32 %v572_v29, %v570_v41  ;;  %v588_v3 = vadd.s32 %v587_v21, %v585_v42  ;;  %1071 = vmatmul.mubr.msk.f32.gmra.mxu1 %vm281_vm1, %v930_v25 }
 0x2ae   :  { %v599_v6 = vpop.xlane.xlu1 %598  ;;  %1073 = vmatprep.mubr.msk.f32.mxu1 %vm281_vm1, %v931_v38 }
 0x2af   :  { %618 = vst.msk [vmem:[%s1698_s4 + $0x68] sm:$0xff] %vm604_vm6, %v573_v39  ;;  %619 = vst.msk [vmem:[%s1698_s4 + $0x70] sm:$0xff] %vm604_vm6, %v588_v3  ;;  %vm635_vm7 = vcmp.eq.s32.totalorder %v1277_v10, %v588_v3  ;;  %v600_v58 = vcvt.f32.s32 %v599_v6  ;;  %vm634_vm8 = vcmp.eq.s32.totalorder %v1277_v10, %v573_v39 }
 0x2b0   :  { %v932_v53 = vsel %vm634_vm8, 1.0, %v1080_v48  ;;  %v933_v54 = vsel %vm635_vm7, 1.0, %v1080_v48 }
 0x2b1   :  { %v603_v49 = vadd.s32 %v602_v15, %v600_v58  ;;  %1074 = vmatmul.mubr.msk.f32.gmra.mxu1 %vm281_vm1, %v932_v53 }
 0x2b2   :  { %1076 = vmatprep.mubr.msk.f32.mxu1 %vm281_vm1, %v933_v54 }
 0x2b3   :  { %620 = vst.msk [vmem:[%s1698_s4 + $0x78] sm:$0xff] %vm604_vm6, %v603_v49  ;;  %vm636_vm9 = vcmp.eq.s32.totalorder %v1277_v10, %v603_v49 }
 0x2b4   :  { %v934_v51 = vsel %vm636_vm9, 1.0, %v1080_v48 }
 0x2b5   :  { %1077 = vmatmul.mubr.msk.f32.gmra.mxu1 %vm281_vm1, %v934_v51 }
 0x359   :  { %v1057_v17 = vpop.f32.mrf.mxu1 }
 0x35a   :  { %871 = vst.msk [vmem:[%s1699_s3 + $0x8] sm:$0xff] %vm40_vm0, %v1057_v17 }
 0x35b   :  { %v791_v18 = vpop.f32.mrf.mxu1 }
 0x35c   :  { %870 = vst.msk [vmem:[%s1699_s3] sm:$0xff] %vm40_vm0, %v791_v18 }
 0x35d   :  { %v1060_v1 = vpop.f32.mrf.mxu1 }
 0x35e   :  { %873 = vst.msk [vmem:[%s1699_s3 + $0x18] sm:$0xff] %vm40_vm0, %v1060_v1 }
 0x35f   :  { %v801_v10 = vpop.f32.mrf.mxu1 }
 0x360   :  { %872 = vst.msk [vmem:[%s1699_s3 + $0x10] sm:$0xff] %vm40_vm0, %v801_v10 }
 0x361   :  { %v1063_v48 = vpop.f32.mrf.mxu1 }
 0x362   :  { %875 = vst.msk [vmem:[%s1699_s3 + $0x28] sm:$0xff] %vm40_vm0, %v1063_v48 }
 0x363   :  { %v811_v2 = vpop.f32.mrf.mxu1 }
 0x364   :  { %874 = vst.msk [vmem:[%s1699_s3 + $0x20] sm:$0xff] %vm40_vm0, %v811_v2 }
 0x365   :  { %v1066_v7 = vpop.f32.mrf.mxu1 }
 0x366   :  { %877 = vst.msk [vmem:[%s1699_s3 + $0x38] sm:$0xff] %vm40_vm0, %v1066_v7 }
 0x367   :  { %v821_v8 = vpop.f32.mrf.mxu1 }
 0x368   :  { %876 = vst.msk [vmem:[%s1699_s3 + $0x30] sm:$0xff] %vm40_vm0, %v821_v8 }
 0x369   :  { %v1069_v61 = vpop.f32.mrf.mxu1 }
 0x36a   :  { %879 = vst.msk [vmem:[%s1699_s3 + $0x48] sm:$0xff] %vm40_vm0, %v1069_v61 }
 0x36b   :  { %v831_v63 = vpop.f32.mrf.mxu1 }
 0x36c   :  { %878 = vst.msk [vmem:[%s1699_s3 + $0x40] sm:$0xff] %vm40_vm0, %v831_v63 }
 0x36d   :  { %v1072_v4 = vpop.f32.mrf.mxu1 }
 0x36e   :  { %881 = vst.msk [vmem:[%s1699_s3 + $0x58] sm:$0xff] %vm40_vm0, %v1072_v4 }
 0x36f   :  { %v841_v27 = vpop.f32.mrf.mxu1 }
 0x370   :  { %880 = vst.msk [vmem:[%s1699_s3 + $0x50] sm:$0xff] %vm40_vm0, %v841_v27 }
 0x371   :  { %v1075_v12 = vpop.f32.mrf.mxu1 }
 0x372   :  { %883 = vst.msk [vmem:[%s1699_s3 + $0x68] sm:$0xff] %vm40_vm0, %v1075_v12 }
 0x373   :  { %v851_v14 = vpop.f32.mrf.mxu1 }
 0x374   :  { %882 = vst.msk [vmem:[%s1699_s3 + $0x60] sm:$0xff] %vm40_vm0, %v851_v14 }
 0x375   :  { %v1078_v9 = vpop.f32.mrf.mxu1 }
 0x376   :  { %885 = vst.msk [vmem:[%s1699_s3 + $0x78] sm:$0xff] %vm40_vm0, %v1078_v9 }
 0x377   :  { %v861_v11 = vpop.f32.mrf.mxu1 }
 0x378   :  { %884 = vst.msk [vmem:[%s1699_s3 + $0x70] sm:$0xff] %vm40_vm0, %v861_v11 }

</bundles_post_ra>
